<compile_context>
chip_gen: v6e
topology: v6e:2x2x1
jax: 0.10.0
libtpu: 0.0.40
codegen_flags: <defaults>
</compile_context>

<pallas_src>
import jax
import jax.numpy as jnp
from jax.experimental import pallas as pl
from jax.experimental.pallas import tpu as pltpu


def _round_up(v, m):
    return ((v + m - 1) // m) * m


def make_mlp_kernel(num_layers, compute_dtype):
    """All `num_layers` Linear(+ReLU) layers fused in one kernel body."""

    def kernel(*refs):
        x_ref = refs[0]
        o_ref = refs[-1]
        params = refs[1:-1]          # interleaved (w0, b0, w1, b1, ...)

        h = x_ref[...]               # keep MXU inputs in the model dtype
        for i in range(num_layers):
            w = params[2 * i][...]
            b = params[2 * i + 1][...]
            lhs = h if h.dtype == compute_dtype else h.astype(compute_dtype)
            acc = jnp.dot(lhs, w, preferred_element_type=jnp.float32)
            acc = acc + b.astype(jnp.float32)        # bias + ReLU in f32
            if i < num_layers - 1:                   # F.relu on all but last
                acc = jnp.maximum(acc, 0.0)
            h = acc
        o_ref[...] = h.astype(o_ref.dtype)

    return kernel


def mlp_pallas(x, weights, biases, *, tm=256, lane=128,
               vmem_soft_budget=48 * 1024 * 1024):
    """weights[i]: (d_in_i, d_out_i) (already transposed); biases[i]: (d_out_i,)."""
    num_layers = len(weights)
    input_dim = weights[0].shape[0]
    output_dim = weights[-1].shape[1]

    orig_shape = x.shape
    assert orig_shape[-1] == input_dim
    x2d = x.reshape(-1, input_dim)
    M = x2d.shape[0]

    act_dtype = x2d.dtype
    act_bytes = jnp.dtype(act_dtype).itemsize
    # Sublane packing: 8 rows/vreg for 32-bit, 16 for 16-bit, 32 for 8-bit.
    sub = max(8, 32 // act_bytes)

    # ---- pad hidden/output feature dims to lane (128) multiples -------------
    # Zero padding is exact: padded output columns are 0 (their weight columns
    # and bias entries are 0), stay 0 through ReLU, and the matching rows of
    # the next (zero-padded) weight contribute nothing downstream.  The first
    # layer's input dim stays unpadded (full-array block is legal, and this
    # avoids touching/padding the activation tensor in HBM).
    padded_w, padded_b = [], []
    p_in = input_dim
    for w, b in zip(weights, biases):
        n_in, n_out = w.shape
        p_out = _round_up(n_out, lane)
        padded_w.append(jnp.pad(w, ((0, p_in - n_in), (0, p_out - n_out))))
        padded_b.append(jnp.pad(b.reshape(1, -1), ((0, 0), (0, p_out - n_out))))
        p_in = p_out
    out_dim_p = p_in

    # ---- pick the row tile under an explicit VMEM budget ---------------------
    tm_eff = min(_round_up(tm, sub), _round_up(M, sub))

    def vmem_estimate(rows):
        est = 2 * rows * input_dim * act_bytes            # x tile (double-buffered)
        est += 2 * rows * out_dim_p * act_bytes           # out tile (double-buffered)
        for w, b in zip(padded_w, padded_b):              # resident params (2 bufs)
            est += 2 * (w.size * w.dtype.itemsize + b.size * b.dtype.itemsize)
        max_feat = max(w.shape[1] for w in padded_w)
        est += 2 * rows * max_feat * 4                    # live f32 intermediates
        return est

    est = vmem_estimate(tm_eff)
    while est > vmem_soft_budget and tm_eff > sub:
        tm_eff = max(sub, _round_up(tm_eff // 2, sub))
        est = vmem_estimate(tm_eff)
    vmem_limit = min(max(int(est * 1.5) + (2 << 20), 32 << 20), 64 << 20)

    # ---- specs ---------------------------------------------------------------
    in_specs = [pl.BlockSpec((tm_eff, input_dim), lambda i: (i, 0))]
    params = []
    for w, b in zip(padded_w, padded_b):
        in_specs.append(pl.BlockSpec(w.shape, lambda i: (0, 0)))
        in_specs.append(pl.BlockSpec(b.shape, lambda i: (0, 0)))
        params.extend([w, b])

    flops = 2 * M * sum(int(w.shape[0]) * int(w.shape[1]) for w in padded_w)
    bytes_accessed = (x2d.size * act_bytes
                      + sum(w.size * w.dtype.itemsize for w in padded_w)
                      + sum(b.size * b.dtype.itemsize for b in padded_b)
                      + M * out_dim_p * act_bytes)

    out = pl.pallas_call(
        make_mlp_kernel(num_layers, act_dtype),
        out_shape=jax.ShapeDtypeStruct((M, out_dim_p), act_dtype),
        grid_spec=pltpu.PrefetchScalarGridSpec(
            num_scalar_prefetch=0,
            grid=(pl.cdiv(M, tm_eff),),       # partial last tile handled by Pallas
            in_specs=in_specs,
            out_specs=pl.BlockSpec((tm_eff, out_dim_p), lambda i: (i, 0)),
        ),
        compiler_params=pltpu.CompilerParams(
            dimension_semantics=("parallel",),   # row tiles shard across TCs
            vmem_limit_bytes=vmem_limit,
        ),
        cost_estimate=pl.CostEstimate(
            flops=flops, transcendentals=0, bytes_accessed=bytes_accessed),
    )(x2d, *params)

    out = out[:, :output_dim]                    # drop lane padding
    return out.reshape(*orig_shape[:-1], output_dim)


def init_mlp_params(key, input_dim, hidden_dim, output_dim, num_layers,
                    dtype=jnp.float32):
    """Deterministic init mirroring nn.Linear's U(-1/sqrt(fan_in), 1/sqrt(fan_in))."""
    h = [hidden_dim] * (num_layers - 1)
    dims = list(zip([input_dim] + h, h + [output_dim]))
    weights, biases = [], []
    for (n_in, n_out) in dims:
        key, kw, kb = jax.random.split(key, 3)
        bound = 1.0 / jnp.sqrt(jnp.array(n_in, dtype))
        # stored directly in (in, out) layout (== torch W.T)
        w = jax.random.uniform(kw, (n_in, n_out), dtype, -bound, bound)
        b = jax.random.uniform(kb, (n_out,), dtype, -bound, bound)
        weights.append(w)
        biases.append(b)
    return weights, biases


def mlp_reference(x, weights, biases):
    num_layers = len(weights)
    h = x
    for i, (w, b) in enumerate(zip(weights, biases)):
        h = h @ w + b
        if i < num_layers - 1:
            h = jnp.maximum(h, 0.0)
    return h


if __name__ == "__main__":
    key = jax.random.PRNGKey(0)
    input_dim, hidden_dim, output_dim, num_layers = 16, 32, 8, 3

    # --- Test 1: small f32 shapes matching the module (batch=2, seq=8) -------
    batch, seq = 2, 8
    kx, kp, kx2, kp2 = jax.random.split(key, 4)
    x = jax.random.normal(kx, (batch, seq, input_dim), jnp.float32)
    weights, biases = init_mlp_params(kp, input_dim, hidden_dim, output_dim,
                                      num_layers)

    out = mlp_pallas(x, weights, biases)
    out = jax.block_until_ready(out)

    ref = mlp_reference(x, weights, biases)
    assert out.shape == (batch, seq, output_dim)
    assert jnp.allclose(out, ref, atol=1e-4, rtol=1e-4)

    # --- Test 2: bf16, multi-tile grid with a partial last row tile ----------
    batch2, seq2 = 3, 100                       # M = 300 -> 2 row tiles of 256
    x2 = jax.random.normal(kx2, (batch2, seq2, input_dim),
                           jnp.float32).astype(jnp.bfloat16)
    w32, b32 = init_mlp_params(kp2, input_dim, hidden_dim, output_dim,
                               num_layers)
    weights_bf = [w.astype(jnp.bfloat16) for w in w32]
    biases_bf = [b.astype(jnp.bfloat16) for b in b32]

    out2 = mlp_pallas(x2, weights_bf, biases_bf)
    out2 = jax.block_until_ready(out2)

    ref2 = mlp_reference(x2.astype(jnp.float32),
                         [w.astype(jnp.float32) for w in weights_bf],
                         [b.astype(jnp.float32) for b in biases_bf])
    assert out2.shape == (batch2, seq2, output_dim)
    assert jnp.allclose(out2.astype(jnp.float32), ref2, atol=1e-1, rtol=1e-1)

    print("KERNEL_OK")
</pallas_src>

<mosaic_0001>
module attributes {stable_mosaic.version = 11 : i64} {
  func.func @kernel(%arg0: i32, %arg1: memref<16x16xf32, #tpu.memory_space<vmem>>, %arg2: memref<16x128xf32, #tpu.memory_space<vmem>>, %arg3: memref<1x128xf32, #tpu.memory_space<vmem>>, %arg4: memref<128x128xf32, #tpu.memory_space<vmem>>, %arg5: memref<1x128xf32, #tpu.memory_space<vmem>>, %arg6: memref<128x128xf32, #tpu.memory_space<vmem>>, %arg7: memref<1x128xf32, #tpu.memory_space<vmem>>, %arg8: memref<16x128xf32, #tpu.memory_space<vmem>>) attributes {dimension_semantics = [#tpu.dimension_semantics<parallel>], iteration_bounds = array<i64: 1>, scalar_prefetch = 0 : i64, scratch_operands = 0 : i64, tpu.core_type = #tpu.core_type<tc>, window_params = [{transform_indices = @transform_0, window_bounds = array<i64: 16, 16>}, {pipeline_mode = #tpu.pipeline_mode<synchronous>, transform_indices = @transform_1, window_bounds = array<i64: 16, 128>}, {pipeline_mode = #tpu.pipeline_mode<synchronous>, transform_indices = @transform_2, window_bounds = array<i64: 1, 128>}, {pipeline_mode = #tpu.pipeline_mode<synchronous>, transform_indices = @transform_3, window_bounds = array<i64: 128, 128>}, {pipeline_mode = #tpu.pipeline_mode<synchronous>, transform_indices = @transform_4, window_bounds = array<i64: 1, 128>}, {pipeline_mode = #tpu.pipeline_mode<synchronous>, transform_indices = @transform_5, window_bounds = array<i64: 128, 128>}, {pipeline_mode = #tpu.pipeline_mode<synchronous>, transform_indices = @transform_6, window_bounds = array<i64: 1, 128>}, {transform_indices = @transform_7, window_bounds = array<i64: 16, 128>}]} {
    %c0 = arith.constant 0 : index
    %c0_0 = arith.constant 0 : index
    %0 = vector.load %arg1[%c0, %c0_0] : memref<16x16xf32, #tpu.memory_space<vmem>>, vector<16x16xf32>
    %c0_1 = arith.constant 0 : index
    %c0_2 = arith.constant 0 : index
    %1 = vector.load %arg2[%c0_1, %c0_2] : memref<16x128xf32, #tpu.memory_space<vmem>>, vector<16x128xf32>
    %c0_3 = arith.constant 0 : index
    %c0_4 = arith.constant 0 : index
    %2 = vector.load %arg3[%c0_3, %c0_4] : memref<1x128xf32, #tpu.memory_space<vmem>>, vector<1x128xf32>
    %cst = arith.constant dense<0.000000e+00> : vector<16x128xf32>
    %3 = tpu.matmul %0, %1, %cst {dimension_numbers = #tpu.dot_dimension_numbers<[1], [0], [0], [1], [0, 0, 1, 1], [], []>} : vector<16x16xf32>, vector<16x128xf32>, vector<16x128xf32> -> vector<16x128xf32>
    %4 = vector.broadcast %2 : vector<1x128xf32> to vector<16x128xf32>
    %5 = arith.addf %3, %4 : vector<16x128xf32>
    %cst_5 = arith.constant 0.000000e+00 : f32
    %6 = vector.broadcast %cst_5 : f32 to vector<16x128xf32>
    %7 = arith.maximumf %5, %6 : vector<16x128xf32>
    %c0_6 = arith.constant 0 : index
    %c0_7 = arith.constant 0 : index
    %8 = vector.load %arg4[%c0_6, %c0_7] : memref<128x128xf32, #tpu.memory_space<vmem>>, vector<128x128xf32>
    %c0_8 = arith.constant 0 : index
    %c0_9 = arith.constant 0 : index
    %9 = vector.load %arg5[%c0_8, %c0_9] : memref<1x128xf32, #tpu.memory_space<vmem>>, vector<1x128xf32>
    %cst_10 = arith.constant dense<0.000000e+00> : vector<16x128xf32>
    %10 = tpu.matmul %7, %8, %cst_10 {dimension_numbers = #tpu.dot_dimension_numbers<[1], [0], [0], [1], [0, 0, 1, 1], [], []>} : vector<16x128xf32>, vector<128x128xf32>, vector<16x128xf32> -> vector<16x128xf32>
    %11 = vector.broadcast %9 : vector<1x128xf32> to vector<16x128xf32>
    %12 = arith.addf %10, %11 : vector<16x128xf32>
    %cst_11 = arith.constant 0.000000e+00 : f32
    %13 = vector.broadcast %cst_11 : f32 to vector<16x128xf32>
    %14 = arith.maximumf %12, %13 : vector<16x128xf32>
    %c0_12 = arith.constant 0 : index
    %c0_13 = arith.constant 0 : index
    %15 = vector.load %arg6[%c0_12, %c0_13] : memref<128x128xf32, #tpu.memory_space<vmem>>, vector<128x128xf32>
    %c0_14 = arith.constant 0 : index
    %c0_15 = arith.constant 0 : index
    %16 = vector.load %arg7[%c0_14, %c0_15] : memref<1x128xf32, #tpu.memory_space<vmem>>, vector<1x128xf32>
    %cst_16 = arith.constant dense<0.000000e+00> : vector<16x128xf32>
    %17 = tpu.matmul %14, %15, %cst_16 {dimension_numbers = #tpu.dot_dimension_numbers<[1], [0], [0], [1], [0, 0, 1, 1], [], []>} : vector<16x128xf32>, vector<128x128xf32>, vector<16x128xf32> -> vector<16x128xf32>
    %18 = vector.broadcast %16 : vector<1x128xf32> to vector<16x128xf32>
    %19 = arith.addf %17, %18 : vector<16x128xf32>
    %c0_17 = arith.constant 0 : index
    %c0_18 = arith.constant 0 : index
    %20 = vector.load %arg8[%c0_17, %c0_18] : memref<16x128xf32, #tpu.memory_space<vmem>>, vector<16x128xf32>
    tpu.vector_store %arg8[%c0_17, %c0_18], %19 {strides = array<i32>} : memref<16x128xf32, #tpu.memory_space<vmem>>, vector<16x128xf32>,
    return
  }
  func.func @transform_0(%arg0: i32) -> (i32, i32) {
    %c0_i32 = arith.constant 0 : i32
    %c0_i32_0 = arith.constant 0 : i32
    return %arg0, %c0_i32 : i32, i32
  }
  func.func @transform_1(%arg0: i32) -> (i32, i32) {
    %c0_i32 = arith.constant 0 : i32
    %c0_i32_0 = arith.constant 0 : i32
    %c0_i32_1 = arith.constant 0 : i32
    return %c0_i32, %c0_i32_0 : i32, i32
  }
  func.func @transform_2(%arg0: i32) -> (i32, i32) {
    %c0_i32 = arith.constant 0 : i32
    %c0_i32_0 = arith.constant 0 : i32
    %c0_i32_1 = arith.constant 0 : i32
    return %c0_i32, %c0_i32_0 : i32, i32
  }
  func.func @transform_3(%arg0: i32) -> (i32, i32) {
    %c0_i32 = arith.constant 0 : i32
    %c0_i32_0 = arith.constant 0 : i32
    %c0_i32_1 = arith.constant 0 : i32
    return %c0_i32, %c0_i32_0 : i32, i32
  }
  func.func @transform_4(%arg0: i32) -> (i32, i32) {
    %c0_i32 = arith.constant 0 : i32
    %c0_i32_0 = arith.constant 0 : i32
    %c0_i32_1 = arith.constant 0 : i32
    return %c0_i32, %c0_i32_0 : i32, i32
  }
  func.func @transform_5(%arg0: i32) -> (i32, i32) {
    %c0_i32 = arith.constant 0 : i32
    %c0_i32_0 = arith.constant 0 : i32
    %c0_i32_1 = arith.constant 0 : i32
    return %c0_i32, %c0_i32_0 : i32, i32
  }
  func.func @transform_6(%arg0: i32) -> (i32, i32) {
    %c0_i32 = arith.constant 0 : i32
    %c0_i32_0 = arith.constant 0 : i32
    %c0_i32_1 = arith.constant 0 : i32
    return %c0_i32, %c0_i32_0 : i32, i32
  }
  func.func @transform_7(%arg0: i32) -> (i32, i32) {
    %c0_i32 = arith.constant 0 : i32
    %c0_i32_0 = arith.constant 0 : i32
    return %arg0, %c0_i32 : i32, i32
  }
}

</mosaic_0001>

<bundles_post_ra>
// kernel: tpu_custom_call.1
= control target key start
LH: loop header
LB: loop body
LE: loop exit
PB: predicated region body
PF: predicated region fallthrough
CT: control target
= control target key end

     0   :  { %12 = vsyncpa [#allocation3], 0  ;;  %s721_s0 = inlined_call_operand.hbm [shape: f32[16,16], index: 0, kind: input, shape index: {}]   ;;  %s722_s1 = inlined_call_operand.hbm [shape: f32[16,128], index: 1, kind: input, shape index: {}]   ;;  %s723_s2 = inlined_call_operand.vmem [shape: f32[1,128], index: 2, kind: input, shape index: {}]   ;;  %s724_s3 = inlined_call_operand.hbm [shape: f32[128,128], index: 3, kind: input, shape index: {}]   ;;  %s725_s4 = inlined_call_operand.vmem [shape: f32[1,128], index: 4, kind: input, shape index: {}]   ;;  %s726_s5 = inlined_call_operand.hbm [shape: f32[128,128], index: 5, kind: input, shape index: {}]   ;;  %s727_s6 = inlined_call_operand.vmem [shape: f32[1,128], index: 6, kind: input, shape index: {}]   ;;  %s728_s7 = inlined_call_operand.hbm [shape: f32[16,128], index: 7, kind: output, shape index: {}]  }
   0x1   :  { %13 = vsyncpa [#allocation6], 0 }
   0x2   :  { %14 = vsyncpa [#allocation9], 0 }
   0x3   :  { %15 = vsyncpa [#allocation4], 0  ;;  %s633_s24 = smov [#allocation5]   ;;  %s634_s26 = smov [#allocation2]  }
   0x4   :  { %s33_s25 = sshll.u32 %s633_s24, 4  ;;  %s21_s27 = sshll.u32 %s634_s26, 4  ;;  %s34_s25 = int_to_ptr.vmem [resolvable:$true] %s33_s25  ;;  %s22_s27 = int_to_ptr.vmem [resolvable:$true] %s21_s27 }
   0x5   :  { %s533_s28 = scalar_lea.vmem %s34_s25, 256  ;;  %p538_p1 = scmp.lt.s32.totalorder %s34_s25, %s34_s25 }
   0x6   :  { %p534_p0 = scmp.ne.s32.totalorder %s34_s25, %s533_s28  ;;  %p539_p2 = scmp.lt.s32.totalorder %s533_s28, %s533_s28 }
   0x8   :  { %p540_p3 = por %p539_p2, %p538_p1 }
   0xa   :  { %p541_p4 = pnand %p540_p3, %p534_p0 }
   0xc   :  { %544 = shalt.err (!%p541_p4)
}
   0xd   :  { %s635_s29 = smov 128   ;;  %s636_s30 = smov 8  }
   0xe   :  { %39 = dma.hbm_to_vmem [thread:$0]  %s722_s1, 256, %s34_s25, [#allocation6], %s635_s29, %s635_s29, %s636_s30  }
   0xf   :  { %s553_s10 = scalar_lea.vmem %s22_s27, 256  ;;  %p558_p6 = scmp.lt.s32.totalorder %s22_s27, %s22_s27 }
  0x10   :  { %p554_p5 = scmp.ne.s32.totalorder %s22_s27, %s553_s10  ;;  %p559_p7 = scmp.lt.s32.totalorder %s553_s10, %s553_s10 }
  0x12   :  { %p560_p8 = por %p559_p7, %p558_p6 }
  0x14   :  { %p561_p9 = pnand %p560_p8, %p554_p5 }
  0x16   :  { %564 = shalt.err (!%p561_p9)
}
  0x17   :  { %27 = dma.hbm_to_vmem [thread:$0]  %s721_s0, 256, %s22_s27, [#allocation3], %s635_s29, %s635_s29, %s636_s30  }
  0x18   :  { %s637_s13 = smov [#allocation7]   ;;  %s638_s15 = smov [#allocation8]  }
  0x19   :  { %s47_s14 = sshll.u32 %s637_s13, 4  ;;  %s61_s16 = sshll.u32 %s638_s15, 4  ;;  %s48_s14 = int_to_ptr.vmem [resolvable:$true] %s47_s14  ;;  %s62_s16 = int_to_ptr.vmem [resolvable:$true] %s61_s16 }
  0x1a   :  { %s573_s1 = scalar_lea.vmem %s48_s14, 2048  ;;  %p578_p11 = scmp.lt.s32.totalorder %s48_s14, %s48_s14 }
  0x1b   :  { %p574_p10 = scmp.ne.s32.totalorder %s48_s14, %s573_s1  ;;  %p579_p12 = scmp.lt.s32.totalorder %s573_s1, %s573_s1 }
  0x1d   :  { %p580_p13 = por %p579_p12, %p578_p11 }
  0x1f   :  { %p581_p0 = pnand %p580_p13, %p574_p10 }
  0x21   :  { %584 = shalt.err (!%p581_p0)
}
  0x22   :  { %53 = dma.hbm_to_vmem [thread:$0]  %s724_s3, 2048, %s48_s14, [#allocation6], %s635_s29, %s635_s29, %s636_s30  }
  0x23   :  { %s593_s0 = scalar_lea.vmem %s62_s16, 2048  ;;  %p598_p2 = scmp.lt.s32.totalorder %s62_s16, %s62_s16 }
  0x24   :  { %p594_p1 = scmp.ne.s32.totalorder %s62_s16, %s593_s0  ;;  %p599_p3 = scmp.lt.s32.totalorder %s593_s0, %s593_s0 }
  0x26   :  { %p600_p4 = por %p599_p3, %p598_p2 }
  0x28   :  { %p601_p5 = pnand %p600_p4, %p594_p1 }
  0x2a   :  { %604 = shalt.err (!%p601_p5)
}
  0x2b   :  { %67 = dma.hbm_to_vmem [thread:$0]  %s726_s5, 2048, %s62_s16, [#allocation9], %s635_s29, %s635_s29, %s636_s30  }
  0x2c   :  { %625 = dma.done.wait [#allocation3], 256  }
  0x2d   :  { %626 = vsyncadd [#allocation3], 4294967040 }
  0x2e   :  { %627 = dma.done.wait [#allocation6], 2304  }
  0x2f   :  { %628 = vsyncadd [#allocation6], 4294964992 }
  0x30   :  { %629 = dma.done.wait [#allocation9], 2048  }
  0x31   :  { %630 = vsyncadd [#allocation9], 4294965248  ;;  %vm93_vm0 = vcmask 130048   ;;  %v85_v0 = vld [vmem:[#allocation5 + $0x8] sm:$0xff]  ;;  %v84_v1 = vld [vmem:[#allocation5] sm:$0xff]  ;;  %s639_s24 = smov [#allocation10]  }
  0x32   :  { %v82_v2 = vld [vmem:[#allocation2] sm:$0xff]  ;;  %441 = vmatprep.subr.mxu0 %v85_v0  ;;  %v192_v3 = vld [vmem:[#allocation7 + $0x78] sm:$0xff]  ;;  %v191_v4 = vld [vmem:[#allocation7 + $0x70] sm:$0xff]  ;;  %s382_s25 = sshll.u32 %s639_s24, 4  ;;  %s383_s25 = int_to_ptr.vmem [resolvable:$true] %s382_s25 }
  0x33   :  { %445 = vmatprep.mubr.msk.f32.mxu0 %vm93_vm0, %v82_v2  ;;  %442 = vmatpush3.msra.mxu0 %v85_v0  ;;  %v83_v5 = vld [vmem:[#allocation2 + $0x8] sm:$0xff]  ;;  %v189_v7 = vld [vmem:[#allocation7 + $0x60] sm:$0xff]  ;;  %v188_v8 = vld [vmem:[#allocation7 + $0x58] sm:$0xff]  ;;  %p610_p7 = scmp.lt.s32.totalorder %s383_s25, %s383_s25 }
  0x34   :  { %448 = vmatprep.subr.mxu1 %v192_v3  ;;  %443 = vmatprep.subr.mxu0 %v84_v1  ;;  %v190_v6 = vld [vmem:[#allocation7 + $0x68] sm:$0xff]  ;;  %v187_v9 = vld [vmem:[#allocation7 + $0x50] sm:$0xff]  ;;  %v185_v11 = vld [vmem:[#allocation7 + $0x40] sm:$0xff] }
  0x35   :  { %449 = vmatpush3.msra.mxu1 %v192_v3  ;;  %444 = vmatpush3.msra.mxu0 %v84_v1  ;;  %v186_v10 = vld [vmem:[#allocation7 + $0x48] sm:$0xff]  ;;  %v184_v12 = vld [vmem:[#allocation7 + $0x38] sm:$0xff]  ;;  %v183_v13 = vld [vmem:[#allocation7 + $0x30] sm:$0xff] }
  0x36   :  { %450 = vmatprep.subr.mxu1 %v191_v4  ;;  %446 = vmatmul.mubr.msk.f32.vlgmr.msra.gmra.mxu0 %vm93_vm0, %v83_v5  ;;  %v182_v14 = vld [vmem:[#allocation7 + $0x28] sm:$0xff]  ;;  %v181_v15 = vld [vmem:[#allocation7 + $0x20] sm:$0xff]  ;;  %v180_v16 = vld [vmem:[#allocation7 + $0x18] sm:$0xff] }
  0x37   :  { %451 = vmatpush3.msra.mxu1 %v191_v4  ;;  %v179_v17 = vld [vmem:[#allocation7 + $0x10] sm:$0xff]  ;;  %v178_v18 = vld [vmem:[#allocation7 + $0x8] sm:$0xff]  ;;  %v177_v19 = vld [vmem:[#allocation7] sm:$0xff] }
  0x38   :  { %452 = vmatprep.subr.mxu1 %v190_v6  ;;  %v292_v20 = vld [vmem:[#allocation8 + $0x78] sm:$0xff]  ;;  %v291_v21 = vld [vmem:[#allocation8 + $0x70] sm:$0xff]  ;;  %v290_v22 = vld [vmem:[#allocation8 + $0x68] sm:$0xff] }
  0x39   :  { %453 = vmatpush3.msra.mxu1 %v190_v6  ;;  %483 = vmatprep.subr.mxu0 %v292_v20  ;;  %v289_v23 = vld [vmem:[#allocation8 + $0x60] sm:$0xff]  ;;  %v288_v24 = vld [vmem:[#allocation8 + $0x58] sm:$0xff]  ;;  %v287_v25 = vld [vmem:[#allocation8 + $0x50] sm:$0xff] }
  0x3a   :  { %454 = vmatprep.subr.mxu1 %v189_v7  ;;  %484 = vmatpush3.msra.mxu0 %v292_v20  ;;  %v286_v26 = vld [vmem:[#allocation8 + $0x48] sm:$0xff]  ;;  %v285_v27 = vld [vmem:[#allocation8 + $0x40] sm:$0xff]  ;;  %v284_v28 = vld [vmem:[#allocation8 + $0x38] sm:$0xff] }
  0x3b   :  { %455 = vmatpush3.msra.mxu1 %v189_v7  ;;  %485 = vmatprep.subr.mxu0 %v291_v21  ;;  %v283_v29 = vld [vmem:[#allocation8 + $0x30] sm:$0xff]  ;;  %v282_v30 = vld [vmem:[#allocation8 + $0x28] sm:$0xff]  ;;  %v281_v31 = vld [vmem:[#allocation8 + $0x20] sm:$0xff] }
  0x3c   :  { %456 = vmatprep.subr.mxu1 %v188_v8  ;;  %486 = vmatpush3.msra.mxu0 %v291_v21  ;;  %v396_v32 = vld [vmem:[%s723_s2] ss:$0 sm:$0xff]  ;;  %v280_v39 = vld [vmem:[#allocation8 + $0x18] sm:$0xff]  ;;  %v279_v40 = vld [vmem:[#allocation8 + $0x10] sm:$0xff] }
  0x3d   :  { %457 = vmatpush3.msra.mxu1 %v188_v8  ;;  %487 = vmatprep.subr.mxu0 %v290_v22  ;;  %v278_v41 = vld [vmem:[#allocation8 + $0x8] sm:$0xff]  ;;  %v277_v42 = vld [vmem:[#allocation8] sm:$0xff] }
  0x3e   :  { %458 = vmatprep.subr.mxu1 %v187_v9  ;;  %488 = vmatpush3.msra.mxu0 %v290_v22  ;;  %v399_v43 = vld [vmem:[%s725_s4] ss:$0 sm:$0xff]  ;;  %s605_s4 = scalar_lea.vmem %s383_s25, 256 }
  0x3f   :  { %459 = vmatpush3.msra.mxu1 %v187_v9  ;;  %489 = vmatprep.subr.mxu0 %v289_v23  ;;  %v400_v50 = vld [vmem:[%s727_s6] ss:$0 sm:$0xff]  ;;  %p606_p6 = scmp.ne.s32.totalorder %s383_s25, %s605_s4  ;;  %p611_p8 = scmp.lt.s32.totalorder %s605_s4, %s605_s4 }
  0x40   :  { %460 = vmatprep.subr.mxu1 %v186_v10  ;;  %490 = vmatpush3.msra.mxu0 %v289_v23 }
  0x41   :  { %461 = vmatpush3.msra.mxu1 %v186_v10  ;;  %491 = vmatprep.subr.mxu0 %v288_v24  ;;  %p612_p9 = por %p611_p8, %p610_p7 }
  0x42   :  { %462 = vmatprep.subr.mxu1 %v185_v11  ;;  %492 = vmatpush3.msra.mxu0 %v288_v24 }
  0x43   :  { %463 = vmatpush3.msra.mxu1 %v185_v11  ;;  %493 = vmatprep.subr.mxu0 %v287_v25  ;;  %p613_p10 = pnand %p612_p9, %p606_p6 }
  0x44   :  { %464 = vmatprep.subr.mxu1 %v184_v12  ;;  %494 = vmatpush3.msra.mxu0 %v287_v25 }
  0x45   :  { %465 = vmatpush3.msra.mxu1 %v184_v12  ;;  %495 = vmatprep.subr.mxu0 %v286_v26 }
  0x46   :  { %466 = vmatprep.subr.mxu1 %v183_v13  ;;  %496 = vmatpush3.msra.mxu0 %v286_v26 }
  0x47   :  { %467 = vmatpush3.msra.mxu1 %v183_v13  ;;  %497 = vmatprep.subr.mxu0 %v285_v27 }
  0x48   :  { %468 = vmatprep.subr.mxu1 %v182_v14  ;;  %498 = vmatpush3.msra.mxu0 %v285_v27 }
  0x49   :  { %469 = vmatpush3.msra.mxu1 %v182_v14  ;;  %499 = vmatprep.subr.mxu0 %v284_v28 }
  0x4a   :  { %470 = vmatprep.subr.mxu1 %v181_v15  ;;  %500 = vmatpush3.msra.mxu0 %v284_v28 }
  0x4b   :  { %471 = vmatpush3.msra.mxu1 %v181_v15  ;;  %501 = vmatprep.subr.mxu0 %v283_v29 }
  0x4c   :  { %472 = vmatprep.subr.mxu1 %v180_v16  ;;  %502 = vmatpush3.msra.mxu0 %v283_v29 }
  0x4d   :  { %473 = vmatpush3.msra.mxu1 %v180_v16  ;;  %503 = vmatprep.subr.mxu0 %v282_v30 }
  0x4e   :  { %474 = vmatprep.subr.mxu1 %v179_v17  ;;  %504 = vmatpush3.msra.mxu0 %v282_v30 }
  0x4f   :  { %475 = vmatpush3.msra.mxu1 %v179_v17  ;;  %505 = vmatprep.subr.mxu0 %v281_v31 }
  0x50   :  { %476 = vmatprep.subr.mxu1 %v178_v18  ;;  %506 = vmatpush3.msra.mxu0 %v281_v31 }
  0x51   :  { %477 = vmatpush3.msra.mxu1 %v178_v18  ;;  %507 = vmatprep.subr.mxu0 %v280_v39 }
  0x52   :  { %478 = vmatprep.subr.mxu1 %v177_v19  ;;  %508 = vmatpush3.msra.mxu0 %v280_v39 }
  0x53   :  { %479 = vmatpush3.msra.mxu1 %v177_v19  ;;  %509 = vmatprep.subr.mxu0 %v279_v40 }
  0x54   :  { %510 = vmatpush3.msra.mxu0 %v279_v40 }
  0x55   :  { %511 = vmatprep.subr.mxu0 %v278_v41 }
  0x56   :  { %512 = vmatpush3.msra.mxu0 %v278_v41 }
  0x57   :  { %513 = vmatprep.subr.mxu0 %v277_v42 }
  0x58   :  { %514 = vmatpush3.msra.mxu0 %v277_v42 }
  0xf6   :  { %v447_v33 = vpop.f32.mrf.mxu0 }
  0xf7   :  { %v172_v34 = vadd.f32 %v447_v33, %v396_v32 }
  0xf8   :  { %v166_v35 = vpop.f32.mrf.mxu0 }
  0xf9   :  { %v167_v36 = vadd.f32 %v396_v32, %v166_v35  ;;  %v176_v38 = vmax.f32 %v172_v34, 0.0 }
  0xfb   :  { %v175_v37 = vmax.f32 %v167_v36, 0.0 }
  0xfd   :  { %480 = vmatprep.mubr.f32.mxu1 %v175_v37 }
  0xfe   :  { %481 = vmatmul.mubr.f32.vlgmr.msra.gmra.mxu1 %v176_v38 }
 0x1be   :  { %v482_v44 = vpop.f32.mrf.mxu1 }
 0x1bf   :  { %v272_v45 = vadd.f32 %v482_v44, %v399_v43 }
 0x1c0   :  { %v266_v46 = vpop.f32.mrf.mxu1 }
 0x1c1   :  { %v267_v47 = vadd.f32 %v399_v43, %v266_v46  ;;  %v276_v49 = vmax.f32 %v272_v45, 0.0 }
 0x1c3   :  { %v275_v48 = vmax.f32 %v267_v47, 0.0 }
 0x1c5   :  { %515 = vmatprep.mubr.f32.mxu0 %v275_v48 }
 0x1c6   :  { %516 = vmatmul.mubr.f32.vlgmr.msra.gmra.mxu0 %v276_v49 }
 0x286   :  { %v517_v51 = vpop.f32.mrf.mxu0 }
 0x287   :  { %v372_v52 = vadd.f32 %v517_v51, %v400_v50 }
 0x288   :  { %v366_v53 = vpop.f32.mrf.mxu0 }
 0x289   :  { %376 = vst [vmem:[#allocation10 + $0x8] sm:$0xff] %v372_v52  ;;  %v367_v54 = vadd.f32 %v400_v50, %v366_v53 }
 0x28b   :  { %375 = vst [vmem:[#allocation10] sm:$0xff] %v367_v54 }
 0x28c   :  { %616 = shalt.err (!%p613_p10)
}
 0x28d   :  { %388 = dma.vmem_to_hbm [thread:$0]  %s383_s25, 256, %s728_s7, [#allocation4], %s635_s29, %s635_s29, %s636_s30  }
 0x28e   :  { %631 = dma.done.wait [#allocation4], 256  }
 0x28f   :  { %632 = vsyncadd [#allocation4], 4294967040 }
 0x290   :  { %392 = vsyncpa [#allocation3], 1 }
 0x291   :  { %393 = vsyncpa [#allocation6], 1 }
 0x292   :  { %394 = vsyncpa [#allocation9], 1 }
 0x293   :  { %395 = vsyncpa [#allocation4], 1 }

</bundles_post_ra>
